<compile_context>
chip_gen: v7x
topology: tpu7x:2x2x1
jax: 0.10.0
libtpu: 0.0.40
codegen_flags: <defaults>
</compile_context>

<pallas_src>
import functools

import jax
import jax.numpy as jnp
import numpy as np
from jax.experimental import pallas as pl
from jax.experimental.pallas import tpu as pltpu

# ---- module hyper-parameters (from the PyTorch script) ----
HIDDEN_DIM = 100
INPUT_DIM = 7
LAYER_DIM = 1          # single layer RNN
OUTPUT_DIM = 1

LANE = 128
SUBLANE = 8


def _round_up(x, m):
    return (x + m - 1) // m * m


def rnn_kernel(x_ref, wih_ref, whh_ref, b_ref, wfc_hbm, bfc_hbm, out_ref,
               wfc_buf, bfc_buf, sem):
    """Whole sequence in one invocation.

    x_ref   : (T, B_pad, D_pad)  VMEM, time-major, zero-padded input (f32)
    wih_ref : (D_pad, H_pad)     VMEM, W_ih^T padded (f32)
    whh_ref : (H_pad, H_pad)     VMEM, W_hh^T padded (bf16)
    b_ref   : (1, H_pad)         VMEM, b_ih + b_hh padded (f32)
    wfc_hbm : (H_pad, O_pad)     ANY/HBM, W_fc^T padded (f32)  -> manual DMA
    bfc_hbm : (1, O_pad)         ANY/HBM, b_fc padded (f32)    -> manual DMA
    out_ref : (B_pad, O_pad)     VMEM, fc(h_T)
    wfc_buf/bfc_buf : VMEM scratch landing buffers for the fc params
    sem     : DMA semaphores (2,)
    """
    T, B_pad, D_pad = x_ref.shape
    H_pad = whh_ref.shape[0]

    # Kick off the fc-parameter DMAs immediately so they overlap the serial
    # recurrence; wait only right before the final fc matmul.
    cp_w = pltpu.make_async_copy(wfc_hbm, wfc_buf, sem.at[0])
    cp_b = pltpu.make_async_copy(bfc_hbm, bfc_buf, sem.at[1])
    cp_w.start()
    cp_b.start()

    # Input projection has no dependence on h -> hoisted out of the recurrence
    # as one big MXU matmul (kept f32 for accuracy; one-time cost).
    # NOTE: this reshape is layout-free only because B_pad == 8 and
    # D_pad == 128 land exactly on (8, 128) tile boundaries.
    x_all = x_ref[...].reshape(T * B_pad, D_pad)                # (T*B_pad, D_pad)
    # NOTE: the bias broadcasts onto the zero-padded batch rows, so padded
    # rows of h are nonzero.  Harmless: batch rows never enter a contraction
    # and are sliced off in the wrapper.
    pre_x = (jnp.dot(x_all, wih_ref[...],
                     preferred_element_type=jnp.float32)
             + b_ref[...])                                      # (T*B_pad, H_pad)

    h = jnp.zeros((B_pad, H_pad), jnp.float32)                  # h0 = zeros
    # T is a static trace-time constant -> fully unrolled serial recurrence.
    # The only op on the critical path per step is ONE bf16 MXU push with f32
    # accumulation (+ a VPU add/relu).  W_hh^T is re-read from VMEM each step
    # (bf16, 8 vregs transient) instead of being pinned across the unroll.
    for t in range(T):
        h = jnp.maximum(
            pre_x[t * B_pad:(t + 1) * B_pad, :]
            + jnp.dot(h.astype(jnp.bfloat16), whh_ref[...],
                      preferred_element_type=jnp.float32),
            0.0)

    # fc applied to the hidden state of the LAST timestep only.
    cp_w.wait()
    cp_b.wait()
    out_ref[...] = (
        jnp.dot(h, wfc_buf[...], preferred_element_type=jnp.float32)
        + bfc_buf[...]).astype(out_ref.dtype)


def prepare_padded_params(w_ih, w_hh, b_ih, b_hh, w_fc, b_fc):
    """Pad / transpose / cast the weights ONCE (outside the per-call hot path).

    Zero-padding keeps the math exact; W_hh is cast to bf16 (the recurrence
    matmul runs bf16 x bf16 -> f32 on the MXU).
    """
    H, D = w_ih.shape
    O = w_fc.shape[0]
    D_pad = _round_up(max(D, LANE), LANE)
    H_pad = _round_up(max(H, LANE), LANE)
    O_pad = _round_up(max(O, LANE), LANE)

    wih_t = jnp.pad(w_ih, ((0, H_pad - H), (0, D_pad - D))).T           # (D_pad, H_pad) f32
    whh_t = jnp.pad(w_hh, ((0, H_pad - H), (0, H_pad - H))).T.astype(
        jnp.bfloat16)                                                   # (H_pad, H_pad) bf16
    b = jnp.pad(b_ih + b_hh, (0, H_pad - H)).reshape(1, H_pad)          # (1, H_pad) f32
    wfc_t = jnp.pad(w_fc, ((0, O_pad - O), (0, H_pad - H))).T           # (H_pad, O_pad) f32
    bfc = jnp.pad(b_fc, (0, O_pad - O)).reshape(1, O_pad)               # (1, O_pad) f32
    return wih_t, whh_t, b, wfc_t, bfc


@functools.partial(jax.jit, static_argnames=("out_dim",))
def rnn_forward_padded(x, wih_t, whh_t, b, wfc_t, bfc, *, out_dim):
    """x: (B, T, INPUT_DIM) float32 (batch_first).  Returns (B, out_dim)."""
    B, T, D = x.shape
    D_pad, H_pad = wih_t.shape
    O_pad = wfc_t.shape[1]
    B_pad = _round_up(max(B, SUBLANE), SUBLANE)

    # Time-major, zero-padded input (single tiny relayout fusion inside the
    # jit; weight-side padding is done once outside).
    x_tm = jnp.transpose(x, (1, 0, 2))                                  # (T, B, D)
    x_tm = jnp.pad(x_tm, ((0, 0), (0, B_pad - B), (0, D_pad - D)))

    # Whole working set (< 0.5 MiB) fits in VMEM on v5e/v6e/v7x -> single
    # gridless invocation.  wfc/bfc stay in HBM (pl.ANY) and are DMA'd
    # manually inside the kernel, overlapped with the recurrence.
    vmem = pl.BlockSpec(memory_space=pltpu.MemorySpace.VMEM)
    hbm = pl.BlockSpec(memory_space=pl.ANY)
    out_pad = pl.pallas_call(
        rnn_kernel,
        out_shape=jax.ShapeDtypeStruct((B_pad, O_pad), jnp.float32),
        in_specs=[vmem, vmem, vmem, vmem, hbm, hbm],
        out_specs=vmem,
        scratch_shapes=[
            pltpu.VMEM((H_pad, O_pad), jnp.float32),   # wfc landing buffer
            pltpu.VMEM((1, O_pad), jnp.float32),       # bfc landing buffer
            pltpu.SemaphoreType.DMA((2,)),
        ],
    )(x_tm, wih_t, whh_t, b, wfc_t, bfc)

    return out_pad[:B, :out_dim]


def rnn_forward(x, w_ih, w_hh, b_ih, b_hh, w_fc, b_fc):
    """Convenience wrapper matching the original signature."""
    padded = prepare_padded_params(w_ih, w_hh, b_ih, b_hh, w_fc, b_fc)
    return rnn_forward_padded(x, *padded, out_dim=w_fc.shape[0])


def rnn_forward_ref(x, w_ih, w_hh, b_ih, b_hh, w_fc, b_fc):
    """Pure-JAX f32 reference of the PyTorch forward (correctness check)."""
    B, T, D = x.shape
    H = w_ih.shape[0]
    h = jnp.zeros((B, H), jnp.float32)
    for t in range(T):
        h = jnp.maximum(x[:, t, :] @ w_ih.T + b_ih + h @ w_hh.T + b_hh, 0.0)
    return h @ w_fc.T + b_fc


if __name__ == "__main__":
    key = jax.random.PRNGKey(0)
    ks = jax.random.split(key, 8)

    B, T = 2, 8
    # PyTorch-style uniform(-1/sqrt(H), 1/sqrt(H)) init, deterministic here.
    bound = 1.0 / np.sqrt(HIDDEN_DIM)
    w_ih = jax.random.uniform(ks[0], (HIDDEN_DIM, INPUT_DIM), jnp.float32, -bound, bound)
    w_hh = jax.random.uniform(ks[1], (HIDDEN_DIM, HIDDEN_DIM), jnp.float32, -bound, bound)
    b_ih = jax.random.uniform(ks[2], (HIDDEN_DIM,), jnp.float32, -bound, bound)
    b_hh = jax.random.uniform(ks[3], (HIDDEN_DIM,), jnp.float32, -bound, bound)
    w_fc = jax.random.uniform(ks[4], (OUTPUT_DIM, HIDDEN_DIM), jnp.float32, -bound, bound)
    b_fc = jax.random.uniform(ks[5], (OUTPUT_DIM,), jnp.float32, -bound, bound)

    x = jax.random.normal(ks[6], (B, T, INPUT_DIM), jnp.float32)

    # Pad / transpose / cast weights once (steady-state calls reuse these).
    padded_params = prepare_padded_params(w_ih, w_hh, b_ih, b_hh, w_fc, b_fc)
    padded_params = jax.tree_util.tree_map(jax.block_until_ready, padded_params)

    out = rnn_forward_padded(x, *padded_params, out_dim=OUTPUT_DIM)
    out = jax.block_until_ready(out)

    ref = rnn_forward_ref(x, w_ih, w_hh, b_ih, b_hh, w_fc, b_fc)
    # Tolerance loosened vs. the f32-only version: the recurrence now runs
    # with bf16 operands (f32 accumulation) on the MXU.
    np.testing.assert_allclose(np.asarray(out), np.asarray(ref),
                               rtol=2e-2, atol=2e-2)
    assert out.shape == (B, OUTPUT_DIM)
    print("KERNEL_OK")
</pallas_src>

<mosaic_0001>
module attributes {stable_mosaic.version = 11 : i64} {
  func.func @rnn_kernel(%arg0: memref<8x8x128xf32, #tpu.memory_space<vmem>>, %arg1: memref<128x128xf32, #tpu.memory_space<vmem>>, %arg2: memref<128x128xbf16, #tpu.memory_space<vmem>>, %arg3: memref<1x128xf32, #tpu.memory_space<vmem>>, %arg4: memref<128x128xf32, #tpu.memory_space<any>>, %arg5: memref<1x128xf32, #tpu.memory_space<any>>, %arg6: memref<8x128xf32, #tpu.memory_space<vmem>>, %arg7: memref<128x128xf32, #tpu.memory_space<vmem>>, %arg8: memref<1x128xf32, #tpu.memory_space<vmem>>, %arg9: memref<2x!tpu.dma_semaphore, #tpu.memory_space<semaphore_mem>>) attributes {dimension_semantics = [], scalar_prefetch = 0 : i64, scratch_operands = 3 : i64, tpu.core_type = #tpu.core_type<tc>} {
    %c0_i32 = arith.constant 0 : i32
    %0 = tpu.memref_slice %arg9[%c0_i32] : memref<2x!tpu.dma_semaphore, #tpu.memory_space<semaphore_mem>> -> memref<1x!tpu.dma_semaphore, #tpu.memory_space<semaphore_mem>>
    %1 = tpu.memref_squeeze %0 : memref<1x!tpu.dma_semaphore, #tpu.memory_space<semaphore_mem>> -> memref<!tpu.dma_semaphore, #tpu.memory_space<semaphore_mem>>
    tpu.enqueue_dma source(%arg4 : memref<128x128xf32, #tpu.memory_space<any>>) target(%arg7 : memref<128x128xf32, #tpu.memory_space<vmem>>) target_semaphore(%1 : memref<!tpu.dma_semaphore, #tpu.memory_space<semaphore_mem>>)
    %c1_i32 = arith.constant 1 : i32
    %2 = tpu.memref_slice %arg9[%c1_i32] : memref<2x!tpu.dma_semaphore, #tpu.memory_space<semaphore_mem>> -> memref<1x!tpu.dma_semaphore, #tpu.memory_space<semaphore_mem>>
    %3 = tpu.memref_squeeze %2 : memref<1x!tpu.dma_semaphore, #tpu.memory_space<semaphore_mem>> -> memref<!tpu.dma_semaphore, #tpu.memory_space<semaphore_mem>>
    tpu.enqueue_dma source(%arg5 : memref<1x128xf32, #tpu.memory_space<any>>) target(%arg8 : memref<1x128xf32, #tpu.memory_space<vmem>>) target_semaphore(%3 : memref<!tpu.dma_semaphore, #tpu.memory_space<semaphore_mem>>)
    %c0 = arith.constant 0 : index
    %c0_0 = arith.constant 0 : index
    %c0_1 = arith.constant 0 : index
    %4 = vector.load %arg0[%c0, %c0_0, %c0_1] : memref<8x8x128xf32, #tpu.memory_space<vmem>>, vector<8x8x128xf32>
    %5 = vector.shape_cast %4 : vector<8x8x128xf32> to vector<64x128xf32>
    %c0_2 = arith.constant 0 : index
    %c0_3 = arith.constant 0 : index
    %6 = vector.load %arg1[%c0_2, %c0_3] : memref<128x128xf32, #tpu.memory_space<vmem>>, vector<128x128xf32>
    %cst = arith.constant dense<0.000000e+00> : vector<64x128xf32>
    %7 = tpu.matmul %5, %6, %cst {dimension_numbers = #tpu.dot_dimension_numbers<[1], [0], [0], [1], [0, 0, 1, 1], [], []>} : vector<64x128xf32>, vector<128x128xf32>, vector<64x128xf32> -> vector<64x128xf32>
    %c0_4 = arith.constant 0 : index
    %c0_5 = arith.constant 0 : index
    %8 = vector.load %arg3[%c0_4, %c0_5] : memref<1x128xf32, #tpu.memory_space<vmem>>, vector<1x128xf32>
    %9 = vector.broadcast %8 : vector<1x128xf32> to vector<64x128xf32>
    %10 = arith.addf %7, %9 : vector<64x128xf32>
    %cst_6 = arith.constant 0.000000e+00 : f32
    %11 = vector.broadcast %cst_6 : f32 to vector<8x128xf32>
    %12 = vector.extract_strided_slice %10 {offsets = [0, 0], sizes = [8, 128], strides = [1, 1]} : vector<64x128xf32> to vector<8x128xf32>
    %13 = arith.truncf %11 : vector<8x128xf32> to vector<8x128xbf16>
    %c0_7 = arith.constant 0 : index
    %c0_8 = arith.constant 0 : index
    %14 = vector.load %arg2[%c0_7, %c0_8] : memref<128x128xbf16, #tpu.memory_space<vmem>>, vector<128x128xbf16>
    %cst_9 = arith.constant dense<0.000000e+00> : vector<8x128xf32>
    %15 = tpu.matmul %13, %14, %cst_9 {dimension_numbers = #tpu.dot_dimension_numbers<[1], [0], [0], [1], [0, 0, 1, 1], [], []>} : vector<8x128xbf16>, vector<128x128xbf16>, vector<8x128xf32> -> vector<8x128xf32>
    %16 = arith.addf %12, %15 : vector<8x128xf32>
    %cst_10 = arith.constant 0.000000e+00 : f32
    %17 = vector.broadcast %cst_10 : f32 to vector<8x128xf32>
    %18 = arith.maximumf %16, %17 : vector<8x128xf32>
    %19 = vector.extract_strided_slice %10 {offsets = [8, 0], sizes = [8, 128], strides = [1, 1]} : vector<64x128xf32> to vector<8x128xf32>
    %20 = arith.truncf %18 : vector<8x128xf32> to vector<8x128xbf16>
    %c0_11 = arith.constant 0 : index
    %c0_12 = arith.constant 0 : index
    %21 = vector.load %arg2[%c0_11, %c0_12] : memref<128x128xbf16, #tpu.memory_space<vmem>>, vector<128x128xbf16>
    %cst_13 = arith.constant dense<0.000000e+00> : vector<8x128xf32>
    %22 = tpu.matmul %20, %21, %cst_13 {dimension_numbers = #tpu.dot_dimension_numbers<[1], [0], [0], [1], [0, 0, 1, 1], [], []>} : vector<8x128xbf16>, vector<128x128xbf16>, vector<8x128xf32> -> vector<8x128xf32>
    %23 = arith.addf %19, %22 : vector<8x128xf32>
    %cst_14 = arith.constant 0.000000e+00 : f32
    %24 = vector.broadcast %cst_14 : f32 to vector<8x128xf32>
    %25 = arith.maximumf %23, %24 : vector<8x128xf32>
    %26 = vector.extract_strided_slice %10 {offsets = [16, 0], sizes = [8, 128], strides = [1, 1]} : vector<64x128xf32> to vector<8x128xf32>
    %27 = arith.truncf %25 : vector<8x128xf32> to vector<8x128xbf16>
    %c0_15 = arith.constant 0 : index
    %c0_16 = arith.constant 0 : index
    %28 = vector.load %arg2[%c0_15, %c0_16] : memref<128x128xbf16, #tpu.memory_space<vmem>>, vector<128x128xbf16>
    %cst_17 = arith.constant dense<0.000000e+00> : vector<8x128xf32>
    %29 = tpu.matmul %27, %28, %cst_17 {dimension_numbers = #tpu.dot_dimension_numbers<[1], [0], [0], [1], [0, 0, 1, 1], [], []>} : vector<8x128xbf16>, vector<128x128xbf16>, vector<8x128xf32> -> vector<8x128xf32>
    %30 = arith.addf %26, %29 : vector<8x128xf32>
    %cst_18 = arith.constant 0.000000e+00 : f32
    %31 = vector.broadcast %cst_18 : f32 to vector<8x128xf32>
    %32 = arith.maximumf %30, %31 : vector<8x128xf32>
    %33 = vector.extract_strided_slice %10 {offsets = [24, 0], sizes = [8, 128], strides = [1, 1]} : vector<64x128xf32> to vector<8x128xf32>
    %34 = arith.truncf %32 : vector<8x128xf32> to vector<8x128xbf16>
    %c0_19 = arith.constant 0 : index
    %c0_20 = arith.constant 0 : index
    %35 = vector.load %arg2[%c0_19, %c0_20] : memref<128x128xbf16, #tpu.memory_space<vmem>>, vector<128x128xbf16>
    %cst_21 = arith.constant dense<0.000000e+00> : vector<8x128xf32>
    %36 = tpu.matmul %34, %35, %cst_21 {dimension_numbers = #tpu.dot_dimension_numbers<[1], [0], [0], [1], [0, 0, 1, 1], [], []>} : vector<8x128xbf16>, vector<128x128xbf16>, vector<8x128xf32> -> vector<8x128xf32>
    %37 = arith.addf %33, %36 : vector<8x128xf32>
    %cst_22 = arith.constant 0.000000e+00 : f32
    %38 = vector.broadcast %cst_22 : f32 to vector<8x128xf32>
    %39 = arith.maximumf %37, %38 : vector<8x128xf32>
    %40 = vector.extract_strided_slice %10 {offsets = [32, 0], sizes = [8, 128], strides = [1, 1]} : vector<64x128xf32> to vector<8x128xf32>
    %41 = arith.truncf %39 : vector<8x128xf32> to vector<8x128xbf16>
    %c0_23 = arith.constant 0 : index
    %c0_24 = arith.constant 0 : index
    %42 = vector.load %arg2[%c0_23, %c0_24] : memref<128x128xbf16, #tpu.memory_space<vmem>>, vector<128x128xbf16>
    %cst_25 = arith.constant dense<0.000000e+00> : vector<8x128xf32>
    %43 = tpu.matmul %41, %42, %cst_25 {dimension_numbers = #tpu.dot_dimension_numbers<[1], [0], [0], [1], [0, 0, 1, 1], [], []>} : vector<8x128xbf16>, vector<128x128xbf16>, vector<8x128xf32> -> vector<8x128xf32>
    %44 = arith.addf %40, %43 : vector<8x128xf32>
    %cst_26 = arith.constant 0.000000e+00 : f32
    %45 = vector.broadcast %cst_26 : f32 to vector<8x128xf32>
    %46 = arith.maximumf %44, %45 : vector<8x128xf32>
    %47 = vector.extract_strided_slice %10 {offsets = [40, 0], sizes = [8, 128], strides = [1, 1]} : vector<64x128xf32> to vector<8x128xf32>
    %48 = arith.truncf %46 : vector<8x128xf32> to vector<8x128xbf16>
    %c0_27 = arith.constant 0 : index
    %c0_28 = arith.constant 0 : index
    %49 = vector.load %arg2[%c0_27, %c0_28] : memref<128x128xbf16, #tpu.memory_space<vmem>>, vector<128x128xbf16>
    %cst_29 = arith.constant dense<0.000000e+00> : vector<8x128xf32>
    %50 = tpu.matmul %48, %49, %cst_29 {dimension_numbers = #tpu.dot_dimension_numbers<[1], [0], [0], [1], [0, 0, 1, 1], [], []>} : vector<8x128xbf16>, vector<128x128xbf16>, vector<8x128xf32> -> vector<8x128xf32>
    %51 = arith.addf %47, %50 : vector<8x128xf32>
    %cst_30 = arith.constant 0.000000e+00 : f32
    %52 = vector.broadcast %cst_30 : f32 to vector<8x128xf32>
    %53 = arith.maximumf %51, %52 : vector<8x128xf32>
    %54 = vector.extract_strided_slice %10 {offsets = [48, 0], sizes = [8, 128], strides = [1, 1]} : vector<64x128xf32> to vector<8x128xf32>
    %55 = arith.truncf %53 : vector<8x128xf32> to vector<8x128xbf16>
    %c0_31 = arith.constant 0 : index
    %c0_32 = arith.constant 0 : index
    %56 = vector.load %arg2[%c0_31, %c0_32] : memref<128x128xbf16, #tpu.memory_space<vmem>>, vector<128x128xbf16>
    %cst_33 = arith.constant dense<0.000000e+00> : vector<8x128xf32>
    %57 = tpu.matmul %55, %56, %cst_33 {dimension_numbers = #tpu.dot_dimension_numbers<[1], [0], [0], [1], [0, 0, 1, 1], [], []>} : vector<8x128xbf16>, vector<128x128xbf16>, vector<8x128xf32> -> vector<8x128xf32>
    %58 = arith.addf %54, %57 : vector<8x128xf32>
    %cst_34 = arith.constant 0.000000e+00 : f32
    %59 = vector.broadcast %cst_34 : f32 to vector<8x128xf32>
    %60 = arith.maximumf %58, %59 : vector<8x128xf32>
    %61 = vector.extract_strided_slice %10 {offsets = [56, 0], sizes = [8, 128], strides = [1, 1]} : vector<64x128xf32> to vector<8x128xf32>
    %62 = arith.truncf %60 : vector<8x128xf32> to vector<8x128xbf16>
    %c0_35 = arith.constant 0 : index
    %c0_36 = arith.constant 0 : index
    %63 = vector.load %arg2[%c0_35, %c0_36] : memref<128x128xbf16, #tpu.memory_space<vmem>>, vector<128x128xbf16>
    %cst_37 = arith.constant dense<0.000000e+00> : vector<8x128xf32>
    %64 = tpu.matmul %62, %63, %cst_37 {dimension_numbers = #tpu.dot_dimension_numbers<[1], [0], [0], [1], [0, 0, 1, 1], [], []>} : vector<8x128xbf16>, vector<128x128xbf16>, vector<8x128xf32> -> vector<8x128xf32>
    %65 = arith.addf %61, %64 : vector<8x128xf32>
    %cst_38 = arith.constant 0.000000e+00 : f32
    %66 = vector.broadcast %cst_38 : f32 to vector<8x128xf32>
    %67 = arith.maximumf %65, %66 : vector<8x128xf32>
    %c0_i32_39 = arith.constant 0 : i32
    %68 = tpu.memref_slice %arg9[%c0_i32_39] : memref<2x!tpu.dma_semaphore, #tpu.memory_space<semaphore_mem>> -> memref<1x!tpu.dma_semaphore, #tpu.memory_space<semaphore_mem>>
    %69 = tpu.memref_squeeze %68 : memref<1x!tpu.dma_semaphore, #tpu.memory_space<semaphore_mem>> -> memref<!tpu.dma_semaphore, #tpu.memory_space<semaphore_mem>>
    tpu.wait_dma2 semaphore(%69 : memref<!tpu.dma_semaphore, #tpu.memory_space<semaphore_mem>>) src(%arg4 : memref<128x128xf32, #tpu.memory_space<any>>) dst(%arg7 : memref<128x128xf32, #tpu.memory_space<vmem>>)
    %c1_i32_40 = arith.constant 1 : i32
    %70 = tpu.memref_slice %arg9[%c1_i32_40] : memref<2x!tpu.dma_semaphore, #tpu.memory_space<semaphore_mem>> -> memref<1x!tpu.dma_semaphore, #tpu.memory_space<semaphore_mem>>
    %71 = tpu.memref_squeeze %70 : memref<1x!tpu.dma_semaphore, #tpu.memory_space<semaphore_mem>> -> memref<!tpu.dma_semaphore, #tpu.memory_space<semaphore_mem>>
    tpu.wait_dma2 semaphore(%71 : memref<!tpu.dma_semaphore, #tpu.memory_space<semaphore_mem>>) src(%arg5 : memref<1x128xf32, #tpu.memory_space<any>>) dst(%arg8 : memref<1x128xf32, #tpu.memory_space<vmem>>)
    %c0_41 = arith.constant 0 : index
    %c0_42 = arith.constant 0 : index
    %72 = vector.load %arg7[%c0_41, %c0_42] : memref<128x128xf32, #tpu.memory_space<vmem>>, vector<128x128xf32>
    %cst_43 = arith.constant dense<0.000000e+00> : vector<8x128xf32>
    %73 = tpu.matmul %67, %72, %cst_43 {dimension_numbers = #tpu.dot_dimension_numbers<[1], [0], [0], [1], [0, 0, 1, 1], [], []>} : vector<8x128xf32>, vector<128x128xf32>, vector<8x128xf32> -> vector<8x128xf32>
    %c0_44 = arith.constant 0 : index
    %c0_45 = arith.constant 0 : index
    %74 = vector.load %arg8[%c0_44, %c0_45] : memref<1x128xf32, #tpu.memory_space<vmem>>, vector<1x128xf32>
    %75 = vector.broadcast %74 : vector<1x128xf32> to vector<8x128xf32>
    %76 = arith.addf %73, %75 : vector<8x128xf32>
    %c0_46 = arith.constant 0 : index
    %c0_47 = arith.constant 0 : index
    %77 = vector.load %arg6[%c0_46, %c0_47] : memref<8x128xf32, #tpu.memory_space<vmem>>, vector<8x128xf32>
    tpu.vector_store %arg6[%c0_46, %c0_47], %76 {strides = array<i32>} : memref<8x128xf32, #tpu.memory_space<vmem>>, vector<8x128xf32>,
    return
  }
}

</mosaic_0001>

<bundles_post_ra>
// kernel: rnn_forward_padded.1
= control target key start
LH: loop header
LB: loop body
LE: loop exit
PB: predicated region body
PF: predicated region fallthrough
CT: control target
= control target key end

     0   :  { %11 = vsyncpa [#allocation6], 0  ;;  %s1720_s0 = inlined_call_operand.vmem [shape: f32[8,8,128], index: 0, kind: input, shape index: {}]   ;;  %s1721_s1 = inlined_call_operand.hbm [shape: f32[128,128], index: 1, kind: input, shape index: {}]   ;;  %s1722_s2 = inlined_call_operand.hbm [shape: bf16[128,128], index: 2, kind: input, shape index: {}]   ;;  %s1723_s3 = inlined_call_operand.vmem [shape: f32[1,128], index: 3, kind: input, shape index: {}]   ;;  %s1724_s4 = inlined_call_operand.vmem [shape: f32[128,128], index: 4, kind: input, shape index: {}]   ;;  %s1725_s5 = inlined_call_operand.vmem [shape: f32[1,128], index: 5, kind: input, shape index: {}]   ;;  %s1726_s6 = inlined_call_operand.vmem [shape: f32[8,128], index: 6, kind: output, shape index: {}]  }
   0x1   :  { %12 = vsyncpa [#allocation8], 0  ;;  %s1335_s21 = smov [#allocation5]   ;;  %s1283_s25 = scalar_lea.hbm %s1721_s1, 2048 }
   0x2   :  { %s20_s22 = sshll.u32 %s1335_s21, 4  ;;  %p1284_p0 = scmp.ne.s32.totalorder %s1721_s1, %s1283_s25  ;;  %s21_s22 = int_to_ptr.vmem [resolvable:$true] %s20_s22 }
   0x3   :  { %p1287_p1 = scmp.lt.u32.totalorder %s1283_s25, %s1721_s1 }
   0x5   :  { %p1289_p2 = pnand %p1287_p1, %p1284_p0 }
   0x7   :  { %1292 = shalt.err (!%p1289_p2)
}
   0x8   :  { %s1293_s30 = scalar_lea.vmem %s21_s22, 2048  ;;  %p1298_p4 = scmp.lt.s32.totalorder %s21_s22, %s21_s22 }
   0x9   :  { %p1294_p3 = scmp.ne.s32.totalorder %s21_s22, %s1293_s30  ;;  %p1299_p5 = scmp.lt.s32.totalorder %s1293_s30, %s1293_s30 }
   0xb   :  { %p1300_p6 = por %p1299_p5, %p1298_p4 }
   0xd   :  { %p1301_p7 = pnand %p1300_p6, %p1294_p3 }
   0xf   :  { %1304 = shalt.err (!%p1301_p7)
}
  0x10   :  { %s1336_s7 = smov 128   ;;  %s1337_s8 = smov 8  }
  0x11   :  { %26 = dma.hbm_to_vmem [thread:$0]  %s1721_s1, 2048, %s21_s22, [#allocation6], %s1336_s7, %s1336_s7, %s1337_s8  }
  0x12   :  { %s1338_s11 = smov [#allocation7]   ;;  %s1305_s15 = scalar_lea.hbm %s1722_s2, 1024 }
  0x13   :  { %s32_s12 = sshll.u32 %s1338_s11, 4  ;;  %p1306_p8 = scmp.ne.s32.totalorder %s1722_s2, %s1305_s15  ;;  %s33_s12 = int_to_ptr.vmem [resolvable:$true] %s32_s12 }
  0x14   :  { %p1309_p9 = scmp.lt.u32.totalorder %s1305_s15, %s1722_s2 }
  0x16   :  { %p1311_p10 = pnand %p1309_p9, %p1306_p8 }
  0x18   :  { %1314 = shalt.err (!%p1311_p10)
}
  0x19   :  { %s1315_s20 = scalar_lea.vmem %s33_s12, 1024  ;;  %p1320_p12 = scmp.lt.s32.totalorder %s33_s12, %s33_s12 }
  0x1a   :  { %p1316_p11 = scmp.ne.s32.totalorder %s33_s12, %s1315_s20  ;;  %p1321_p13 = scmp.lt.s32.totalorder %s1315_s20, %s1315_s20 }
  0x1c   :  { %p1322_p0 = por %p1321_p13, %p1320_p12 }
  0x1e   :  { %p1323_p1 = pnand %p1322_p0, %p1316_p11 }
  0x20   :  { %1326 = shalt.err (!%p1323_p1)
}
  0x21   :  { %s1339_s1 = smov 64   ;;  %s1340_s21 = smov 4  }
  0x22   :  { %38 = dma.hbm_to_vmem [thread:$0]  %s1722_s2, 1024, %s33_s12, [#allocation8], %s1339_s1, %s1339_s1, %s1340_s21  }
  0x23   :  { %1327 = dma.done.wait [#allocation6], 2048  }
  0x24   :  { %1328 = vsyncadd [#allocation6], 4294965248 }
  0x25   :  { %1329 = dma.done.wait [#allocation8], 1024  }
  0x26   :  { %1330 = vsyncadd [#allocation8], 4294966272  ;;  %v1407_v0 = vld [vmem:[%s1724_s4] sm:$0xff]  ;;  %v1412_v1 = vld [vmem:[%s1724_s4 + $0x8] sm:$0xff] }
  0x27   :  { %v1417_v2 = vld [vmem:[%s1724_s4 + $0x10] sm:$0xff]  ;;  %v1422_v3 = vld [vmem:[%s1724_s4 + $0x18] sm:$0xff]  ;;  %v1427_v4 = vld [vmem:[%s1724_s4 + $0x20] sm:$0xff] }
  0x28   :  { %v1432_v5 = vld [vmem:[%s1724_s4 + $0x28] sm:$0xff]  ;;  %v1437_v6 = vld [vmem:[%s1724_s4 + $0x30] sm:$0xff]  ;;  %v1442_v7 = vld [vmem:[%s1724_s4 + $0x38] sm:$0xff] }
  0x29   :  { %v1447_v8 = vld [vmem:[%s1724_s4 + $0x40] sm:$0xff]  ;;  %v1452_v9 = vld [vmem:[%s1724_s4 + $0x48] sm:$0xff]  ;;  %v1457_v10 = vld [vmem:[%s1724_s4 + $0x50] sm:$0xff] }
  0x2a   :  { %v1462_v11 = vld [vmem:[%s1724_s4 + $0x58] sm:$0xff]  ;;  %v1467_v12 = vld [vmem:[%s1724_s4 + $0x60] sm:$0xff]  ;;  %v1472_v13 = vld [vmem:[%s1724_s4 + $0x68] sm:$0xff] }
  0x2b   :  { %v1477_v14 = vld [vmem:[%s1724_s4 + $0x70] sm:$0xff]  ;;  %v1482_v15 = vld [vmem:[%s1724_s4 + $0x78] sm:$0xff] }
  0x2c   :  { %119 = vsyncadd [#allocation4], 2048  ;;  %v138_v16 = vld [vmem:[%s1725_s5] sm:$0x1] }
  0x2d   :  { %139 = vst [vmem:[#allocation3] sm:$0x1] %v138_v16 }
  0x2e   :  { %164 = vsyncadd [#allocation4 + $0x1], 16  ;;  %v173_v17 = vld [vmem:[#allocation5] sm:$0xff]  ;;  %v174_v18 = vld [vmem:[#allocation5 + $0x8] sm:$0xff]  ;;  %v1341_v20 = vmov 0.0   ;;  %vm1342_vm0 = vmmov 0  }
  0x2f   :  { %v1209_v19 = vpack.c.bf16 %v174_v18, %v173_v17  ;;  %1014 = vmatprep.subr.bf16.mxu1 %v1341_v20  ;;  %v1488_v21 = vld [vmem:[#allocation7] sm:$0xff]   ;;  %1030 = vmatprep.mubr.msk.bf16.mxu1 %vm1342_vm0, %v1341_v20  ;;  %v175_v22 = vld [vmem:[#allocation5 + $0x10] sm:$0xff]  ;;  %v176_v23 = vld [vmem:[#allocation5 + $0x18] sm:$0xff]  ;;  %v1343_v53 = vmov 0  }
  0x30   :  { %1015 = vmatpush3.bf16.msra.mxu1 %v1488_v21  ;;  %v1213_v24 = vpack.c.bf16 %v176_v23, %v175_v22  ;;  %v1493_v25 = vld [vmem:[#allocation7 + $0x8] sm:$0xff]   ;;  %v177_v26 = vld [vmem:[#allocation5 + $0x20] sm:$0xff]  ;;  %v179_v29 = vld [vmem:[#allocation5 + $0x30] sm:$0xff] }
  0x31   :  { %1210 = vmatprep.subr.bf16.mxu0 %v1209_v19  ;;  %1016 = vmatprep.subr.bf16.mxu1 %v1341_v20  ;;  %v178_v27 = vld [vmem:[#allocation5 + $0x28] sm:$0xff]  ;;  %v180_v30 = vld [vmem:[#allocation5 + $0x38] sm:$0xff]  ;;  %v1497_v31 = vld [vmem:[#allocation7 + $0x10] sm:$0xff]  }
  0x32   :  { %1212 = vmatpush3.bf16.msra.mxu0 %v1209_v19  ;;  %v1217_v28 = vpack.c.bf16 %v178_v27, %v177_v26  ;;  %v1221_v32 = vpack.c.bf16 %v180_v30, %v179_v29  ;;  %v181_v33 = vld [vmem:[#allocation5 + $0x40] sm:$0xff]  ;;  %v182_v34 = vld [vmem:[#allocation5 + $0x48] sm:$0xff]  ;;  %v1501_v35 = vld [vmem:[#allocation7 + $0x18] sm:$0xff]  }
  0x33   :  { %1214 = vmatprep.subr.bf16.mxu0 %v1213_v24  ;;  %v1225_v36 = vpack.c.bf16 %v182_v34, %v181_v33  ;;  %v165_v37 = vld [vmem:[%s1720_s0] sm:$0xff]  ;;  %v183_v38 = vld [vmem:[#allocation5 + $0x50] sm:$0xff]  ;;  %v186_v43 = vld [vmem:[#allocation5 + $0x68] sm:$0xff] }
  0x34   :  { %1017 = vmatpush3.bf16.msra.mxu1 %v1493_v25  ;;  %v184_v39 = vld [vmem:[#allocation5 + $0x58] sm:$0xff]  ;;  %1002 = vmatprep.mubr.f32.mxu0 %v165_v37  ;;  %v1508_v40 = vld [vmem:[#allocation7 + $0x20] sm:$0xff]   ;;  %v1512_v44 = vld [vmem:[#allocation7 + $0x28] sm:$0xff]  }
  0x35   :  { %1018 = vmatprep.subr.bf16.mxu1 %v1341_v20  ;;  %v1229_v41 = vpack.c.bf16 %v184_v39, %v183_v38  ;;  %v185_v42 = vld [vmem:[#allocation5 + $0x60] sm:$0xff]  ;;  %v187_v46 = vld [vmem:[#allocation5 + $0x70] sm:$0xff]  ;;  %v188_v47 = vld [vmem:[#allocation5 + $0x78] sm:$0xff] }
  0x36   :  { %1216 = vmatpush3.bf16.msra.mxu0 %v1213_v24  ;;  %v1233_v45 = vpack.c.bf16 %v186_v43, %v185_v42  ;;  %v1516_v48 = vld [vmem:[#allocation7 + $0x30] sm:$0xff]   ;;  %v1237_v49 = vpack.c.bf16 %v188_v47, %v187_v46  ;;  %v1520_v50 = vld [vmem:[#allocation7 + $0x38] sm:$0xff]   ;;  %v166_v51 = vld [vmem:[%s1720_s0 + $0x8] sm:$0xff] }
  0x37   :  { %1218 = vmatprep.subr.bf16.mxu0 %v1217_v28  ;;  %v167_v52 = vld [vmem:[%s1720_s0 + $0x10] sm:$0xff]  ;;  %v168_v54 = vld [vmem:[%s1720_s0 + $0x18] sm:$0xff]  ;;  %v169_v55 = vld [vmem:[%s1720_s0 + $0x20] sm:$0xff] }
  0x38   :  { %1019 = vmatpush3.bf16.msra.mxu1 %v1497_v31  ;;  %v170_v56 = vld [vmem:[%s1720_s0 + $0x28] sm:$0xff]  ;;  %v171_v57 = vld [vmem:[%s1720_s0 + $0x30] sm:$0xff]  ;;  %v172_v58 = vld [vmem:[%s1720_s0 + $0x38] sm:$0xff] }
  0x39   :  { %1020 = vmatprep.subr.bf16.mxu1 %v1341_v20  ;;  %v1586_v59 = vld [vmem:[%s1723_s3] ss:$0 sm:$0xff] }
  0x3a   :  { %1220 = vmatpush3.bf16.msra.mxu0 %v1217_v28 }
  0x3b   :  { %1222 = vmatprep.subr.bf16.mxu0 %v1221_v32 }
  0x3c   :  { %1021 = vmatpush3.bf16.msra.mxu1 %v1501_v35 }
  0x3d   :  { %1022 = vmatprep.subr.bf16.mxu1 %v1341_v20 }
  0x3e   :  { %1224 = vmatpush3.bf16.msra.mxu0 %v1221_v32 }
  0x3f   :  { %1226 = vmatprep.subr.bf16.mxu0 %v1225_v36 }
  0x40   :  { %1023 = vmatpush3.bf16.msra.mxu1 %v1508_v40 }
  0x41   :  { %1024 = vmatprep.subr.bf16.mxu1 %v1341_v20 }
  0x42   :  { %1228 = vmatpush3.bf16.msra.mxu0 %v1225_v36 }
  0x43   :  { %1230 = vmatprep.subr.bf16.mxu0 %v1229_v41 }
  0x44   :  { %1025 = vmatpush3.bf16.msra.mxu1 %v1512_v44 }
  0x45   :  { %1026 = vmatprep.subr.bf16.mxu1 %v1341_v20 }
  0x46   :  { %1232 = vmatpush3.bf16.msra.mxu0 %v1229_v41 }
  0x47   :  { %1234 = vmatprep.subr.bf16.mxu0 %v1233_v45 }
  0x48   :  { %1027 = vmatpush3.bf16.msra.mxu1 %v1516_v48 }
  0x49   :  { %1028 = vmatprep.subr.bf16.mxu1 %v1341_v20 }
  0x4a   :  { %1236 = vmatpush3.bf16.msra.mxu0 %v1233_v45 }
  0x4b   :  { %1238 = vmatprep.subr.bf16.mxu0 %v1237_v49 }
  0x4c   :  { %1029 = vmatpush3.bf16.msra.mxu1 %v1520_v50 }
  0x4d   :  { %1054 = vmatprep.subr.bf16.mxu1 %v1341_v20 }
  0x4e   :  { %1240 = vmatpush3.bf16.msra.mxu0 %v1237_v49 }
  0x4f   :  { %1034 = vmatprep.subr.bf16.mxu0 %v1341_v20  ;;  %1031 = vmatmul.mubr.bf16.vlgmr.msra.gmra.mrb[0].mxu1 %v1343_v53 }
  0x50   :  { %1055 = vmatpush3.bf16.msra.mxu1 %v1488_v21  ;;  %1070 = vmatprep.mubr.msk.bf16.mxu1 %vm1342_vm0, %v1341_v20 }
  0x51   :  { %1003 = vmatmul.mubr.f32.vlgmr.msra.gmra.mrb[0].mxu0 %v166_v51  ;;  %1056 = vmatprep.subr.bf16.mxu1 %v1341_v20 }
  0x52   :  { %1035 = vmatpush3.bf16.msra.mxu0 %v1488_v21  ;;  %1005 = vmatprep.mubr.f32.mxu0 %v167_v52 }
  0x53   :  { %1036 = vmatprep.subr.bf16.mxu0 %v1341_v20 }
  0x54   :  { %1057 = vmatpush3.bf16.msra.mxu1 %v1493_v25 }
  0x55   :  { %1006 = vmatmul.mubr.f32.gmra.mrb[2].mxu0 %v168_v54  ;;  %1058 = vmatprep.subr.bf16.mxu1 %v1341_v20 }
  0x56   :  { %1037 = vmatpush3.bf16.msra.mxu0 %v1493_v25  ;;  %1008 = vmatprep.mubr.f32.mxu0 %v169_v55 }
  0x57   :  { %1038 = vmatprep.subr.bf16.mxu0 %v1341_v20 }
  0x58   :  { %1059 = vmatpush3.bf16.msra.mxu1 %v1497_v31 }
  0x59   :  { %1060 = vmatprep.subr.bf16.mxu1 %v1341_v20  ;;  %1009 = vmatmul.mubr.f32.gmra.mrb[4].mxu0 %v170_v56 }
  0x5a   :  { %1039 = vmatpush3.bf16.msra.mxu0 %v1497_v31  ;;  %1011 = vmatprep.mubr.f32.mxu0 %v171_v57 }
  0x5b   :  { %1040 = vmatprep.subr.bf16.mxu0 %v1341_v20 }
  0x5c   :  { %1061 = vmatpush3.bf16.msra.mxu1 %v1501_v35 }
  0x5d   :  { %1062 = vmatprep.subr.bf16.mxu1 %v1341_v20  ;;  %1012 = vmatmul.mubr.f32.gmra.mrb[6].mxu0 %v172_v58 }
  0x5e   :  { %1041 = vmatpush3.bf16.msra.mxu0 %v1501_v35  ;;  %1050 = vmatprep.mubr.msk.bf16.mxu0 %vm1342_vm0, %v1341_v20 }
  0x5f   :  { %1042 = vmatprep.subr.bf16.mxu0 %v1341_v20 }
  0x60   :  { %1063 = vmatpush3.bf16.msra.mxu1 %v1508_v40 }
  0x61   :  { %1064 = vmatprep.subr.bf16.mxu1 %v1341_v20 }
  0x62   :  { %1043 = vmatpush3.bf16.msra.mxu0 %v1508_v40 }
  0x63   :  { %1044 = vmatprep.subr.bf16.mxu0 %v1341_v20 }
  0x64   :  { %1065 = vmatpush3.bf16.msra.mxu1 %v1512_v44 }
  0x65   :  { %1066 = vmatprep.subr.bf16.mxu1 %v1341_v20 }
  0x66   :  { %1045 = vmatpush3.bf16.msra.mxu0 %v1512_v44 }
  0x67   :  { %1046 = vmatprep.subr.bf16.mxu0 %v1341_v20 }
  0x68   :  { %1067 = vmatpush3.bf16.msra.mxu1 %v1516_v48 }
  0x69   :  { %1068 = vmatprep.subr.bf16.mxu1 %v1341_v20 }
  0x6a   :  { %1047 = vmatpush3.bf16.msra.mxu0 %v1516_v48 }
  0x6b   :  { %1048 = vmatprep.subr.bf16.mxu0 %v1341_v20 }
  0x6c   :  { %1069 = vmatpush3.bf16.msra.mxu1 %v1520_v50 }
  0x6d   :  { %1094 = vmatprep.subr.bf16.mxu1 %v1341_v20 }
  0x6e   :  { %1049 = vmatpush3.bf16.msra.mxu0 %v1520_v50 }
  0x6f   :  { %1074 = vmatprep.subr.bf16.mxu0 %v1341_v20 }
 0x122   :  { %v399_v60 = vpop.f32.mrb[0].mxu1 }
 0x123   :  { %v1032_v62 = vpop.f32.mrb[1].mxu1 }
 0x124   :  { %v1004_v61 = vpop.f32.mrb[0].mxu0  ;;  %v402_v16 = vpop.f32.mrb[2].mxu1 }
 0x125   :  { %v262_v63 = vpop.f32.mrb[1].mxu0  ;;  %v1033_v18 = vpop.f32.mrb[3].mxu1  ;;  %v268_v32 = vadd.f32 %v1004_v61, %v1586_v59 }
 0x126   :  { %v263_v17 = vadd.f32 %v1586_v59, %v262_v63 }
 0x128   :  { %v405_v19 = vadd.f32 %v399_v60, %v263_v17  ;;  %v1589_v22 = vpop.f32.mrb[2].mxu0 }
 0x129   :  { %v272_v23 = vpop.f32.mrb[3].mxu0  ;;  %v278_v53 = vadd.f32 %v1589_v22, %v1586_v59 }
 0x12a   :  { %v406_v24 = vmax.f32 %v405_v19, 0.0  ;;  %v273_v42 = vadd.f32 %v1586_v59, %v272_v23 }
 0x12c   :  { %v407_v26 = vpack.c.bf16 %v406_v24, %v406_v24  ;;  %v1609_v27 = vpop.f32.mrb[4].mxu0 }
 0x12d   :  { %v1611_v28 = vpop.f32.mrb[5].mxu0 }
 0x12e   :  { %1051 = vmatmul.mubr.bf16.vlgmr.msra.gmra.mrb[8].mxu0 %v407_v26  ;;  %v283_v62 = vadd.f32 %v1586_v59, %v1611_v28 }
 0x12f   :  { %1075 = vmatpush3.bf16.msra.mxu0 %v1488_v21  ;;  %1090 = vmatprep.mubr.msk.bf16.mxu0 %vm1342_vm0, %v1341_v20 }
 0x130   :  { %1076 = vmatprep.subr.bf16.mxu0 %v1341_v20  ;;  %v1613_v29 = vpop.f32.mrb[6].mxu0 }
 0x131   :  { %v1615_v30 = vpop.f32.mrb[7].mxu0 }
 0x133   :  { %1077 = vmatpush3.bf16.msra.mxu0 %v1493_v25 }
 0x134   :  { %1078 = vmatprep.subr.bf16.mxu0 %v1341_v20 }
 0x137   :  { %1079 = vmatpush3.bf16.msra.mxu0 %v1497_v31 }
 0x138   :  { %1080 = vmatprep.subr.bf16.mxu0 %v1341_v20 }
 0x13b   :  { %1081 = vmatpush3.bf16.msra.mxu0 %v1501_v35 }
 0x13c   :  { %1082 = vmatprep.subr.bf16.mxu0 %v1341_v20 }
 0x13f   :  { %1083 = vmatpush3.bf16.msra.mxu0 %v1508_v40 }
 0x140   :  { %1084 = vmatprep.subr.bf16.mxu0 %v1341_v20 }
 0x143   :  { %1085 = vmatpush3.bf16.msra.mxu0 %v1512_v44 }
 0x144   :  { %1086 = vmatprep.subr.bf16.mxu0 %v1341_v20 }
 0x147   :  { %1087 = vmatpush3.bf16.msra.mxu0 %v1516_v48 }
 0x148   :  { %1088 = vmatprep.subr.bf16.mxu0 %v1341_v20 }
 0x14b   :  { %1089 = vmatpush3.bf16.msra.mxu0 %v1520_v50 }
 0x14c   :  { %1114 = vmatprep.subr.bf16.mxu0 %v1341_v20 }
 0x201   :  { %v442_v33 = vpop.f32.mrb[8].mxu0 }
 0x202   :  { %v448_v34 = vadd.f32 %v442_v33, %v268_v32  ;;  %v1052_v36 = vpop.f32.mrb[9].mxu0 }
 0x203   :  { %v445_v37 = vpop.f32.mrb[10].mxu0 }
 0x204   :  { %v449_v38 = vmax.f32 %v448_v34, 0.0  ;;  %v1053_v39 = vpop.f32.mrb[11].mxu0 }
 0x206   :  { %v450_v41 = vpack.c.bf16 %v449_v38, %v449_v38 }
 0x208   :  { %1071 = vmatmul.mubr.bf16.vlgmr.msra.gmra.mrb[4].mxu1 %v450_v41 }
 0x209   :  { %1095 = vmatpush3.bf16.msra.mxu1 %v1488_v21  ;;  %1110 = vmatprep.mubr.msk.bf16.mxu1 %vm1342_vm0, %v1341_v20 }
 0x20a   :  { %1096 = vmatprep.subr.bf16.mxu1 %v1341_v20 }
 0x20d   :  { %1097 = vmatpush3.bf16.msra.mxu1 %v1493_v25 }
 0x20e   :  { %1098 = vmatprep.subr.bf16.mxu1 %v1341_v20 }
 0x211   :  { %1099 = vmatpush3.bf16.msra.mxu1 %v1497_v31 }
 0x212   :  { %1100 = vmatprep.subr.bf16.mxu1 %v1341_v20 }
 0x215   :  { %1101 = vmatpush3.bf16.msra.mxu1 %v1501_v35 }
 0x216   :  { %1102 = vmatprep.subr.bf16.mxu1 %v1341_v20 }
 0x219   :  { %1103 = vmatpush3.bf16.msra.mxu1 %v1508_v40 }
 0x21a   :  { %1104 = vmatprep.subr.bf16.mxu1 %v1341_v20 }
 0x21d   :  { %1105 = vmatpush3.bf16.msra.mxu1 %v1512_v44 }
 0x21e   :  { %1106 = vmatprep.subr.bf16.mxu1 %v1341_v20 }
 0x221   :  { %1107 = vmatpush3.bf16.msra.mxu1 %v1516_v48 }
 0x222   :  { %1108 = vmatprep.subr.bf16.mxu1 %v1341_v20 }
 0x225   :  { %1109 = vmatpush3.bf16.msra.mxu1 %v1520_v50 }
 0x226   :  { %1134 = vmatprep.subr.bf16.mxu1 %v1341_v20 }
 0x2db   :  { %v485_v43 = vpop.f32.mrb[4].mxu1 }
 0x2dc   :  { %v491_v45 = vadd.f32 %v485_v43, %v273_v42  ;;  %v1072_v46 = vpop.f32.mrb[5].mxu1 }
 0x2dd   :  { %v488_v47 = vpop.f32.mrb[6].mxu1 }
 0x2de   :  { %v492_v49 = vmax.f32 %v491_v45, 0.0  ;;  %v1073_v51 = vpop.f32.mrb[7].mxu1 }
 0x2e0   :  { %v493_v52 = vpack.c.bf16 %v492_v49, %v492_v49 }
 0x2e2   :  { %1091 = vmatmul.mubr.bf16.vlgmr.msra.gmra.mrb[12].mxu0 %v493_v52 }
 0x2e3   :  { %1115 = vmatpush3.bf16.msra.mxu0 %v1488_v21  ;;  %1130 = vmatprep.mubr.msk.bf16.mxu0 %vm1342_vm0, %v1341_v20 }
 0x2e4   :  { %1116 = vmatprep.subr.bf16.mxu0 %v1341_v20 }
 0x2e7   :  { %1117 = vmatpush3.bf16.msra.mxu0 %v1493_v25 }
 0x2e8   :  { %1118 = vmatprep.subr.bf16.mxu0 %v1341_v20 }
 0x2eb   :  { %1119 = vmatpush3.bf16.msra.mxu0 %v1497_v31 }
 0x2ec   :  { %1120 = vmatprep.subr.bf16.mxu0 %v1341_v20 }
 0x2ef   :  { %1121 = vmatpush3.bf16.msra.mxu0 %v1501_v35 }
 0x2f0   :  { %1122 = vmatprep.subr.bf16.mxu0 %v1341_v20 }
 0x2f3   :  { %1123 = vmatpush3.bf16.msra.mxu0 %v1508_v40 }
 0x2f4   :  { %1124 = vmatprep.subr.bf16.mxu0 %v1341_v20 }
 0x2f7   :  { %1125 = vmatpush3.bf16.msra.mxu0 %v1512_v44 }
 0x2f8   :  { %1126 = vmatprep.subr.bf16.mxu0 %v1341_v20 }
 0x2fb   :  { %1127 = vmatpush3.bf16.msra.mxu0 %v1516_v48 }
 0x2fc   :  { %1128 = vmatprep.subr.bf16.mxu0 %v1341_v20 }
 0x2ff   :  { %1129 = vmatpush3.bf16.msra.mxu0 %v1520_v50 }
 0x300   :  { %1154 = vmatprep.subr.bf16.mxu0 %v1341_v20 }
 0x3b5   :  { %v528_v54 = vpop.f32.mrb[12].mxu0 }
 0x3b6   :  { %v534_v55 = vadd.f32 %v528_v54, %v278_v53  ;;  %v1092_v56 = vpop.f32.mrb[13].mxu0 }
 0x3b7   :  { %v531_v57 = vpop.f32.mrb[14].mxu0 }
 0x3b8   :  { %v535_v58 = vmax.f32 %v534_v55, 0.0  ;;  %v1093_v60 = vpop.f32.mrb[15].mxu0 }
 0x3ba   :  { %v536_v61 = vpack.c.bf16 %v535_v58, %v535_v58 }
 0x3bc   :  { %1111 = vmatmul.mubr.bf16.vlgmr.msra.gmra.mrb[8].mxu1 %v536_v61 }
 0x3bd   :  { %1135 = vmatpush3.bf16.msra.mxu1 %v1488_v21  ;;  %1150 = vmatprep.mubr.msk.bf16.mxu1 %vm1342_vm0, %v1341_v20 }
 0x3be   :  { %1136 = vmatprep.subr.bf16.mxu1 %v1341_v20 }
 0x3c1   :  { %1137 = vmatpush3.bf16.msra.mxu1 %v1493_v25 }
 0x3c2   :  { %1138 = vmatprep.subr.bf16.mxu1 %v1341_v20 }
 0x3c5   :  { %1139 = vmatpush3.bf16.msra.mxu1 %v1497_v31 }
 0x3c6   :  { %1140 = vmatprep.subr.bf16.mxu1 %v1341_v20 }
 0x3c9   :  { %1141 = vmatpush3.bf16.msra.mxu1 %v1501_v35 }
 0x3ca   :  { %1142 = vmatprep.subr.bf16.mxu1 %v1341_v20 }
 0x3cd   :  { %1143 = vmatpush3.bf16.msra.mxu1 %v1508_v40 }
 0x3ce   :  { %1144 = vmatprep.subr.bf16.mxu1 %v1341_v20 }
 0x3d1   :  { %1145 = vmatpush3.bf16.msra.mxu1 %v1512_v44 }
 0x3d2   :  { %1146 = vmatprep.subr.bf16.mxu1 %v1341_v20 }
 0x3d5   :  { %1147 = vmatpush3.bf16.msra.mxu1 %v1516_v48 }
 0x3d6   :  { %1148 = vmatprep.subr.bf16.mxu1 %v1341_v20 }
 0x3d9   :  { %1149 = vmatpush3.bf16.msra.mxu1 %v1520_v50 }
 0x48f   :  { %v571_v63 = vpop.f32.mrb[8].mxu1 }
 0x490   :  { %v577_v16 = vadd.f32 %v571_v63, %v283_v62  ;;  %v1112_v17 = vpop.f32.mrb[9].mxu1 }
 0x491   :  { %v574_v18 = vpop.f32.mrb[10].mxu1 }
 0x492   :  { %v578_v19 = vmax.f32 %v577_v16, 0.0  ;;  %v1113_v22 = vpop.f32.mrb[11].mxu1 }
 0x494   :  { %v579_v23 = vpack.c.bf16 %v578_v19, %v578_v19 }
 0x496   :  { %1131 = vmatmul.mubr.bf16.vlgmr.msra.gmra.mrb[16].mxu0 %v579_v23 }
 0x497   :  { %1155 = vmatpush3.bf16.msra.mxu0 %v1488_v21  ;;  %1170 = vmatprep.mubr.msk.bf16.mxu0 %vm1342_vm0, %v1341_v20  ;;  %v288_v21 = vadd.f32 %v1609_v27, %v1586_v59  ;;  %v298_v27 = vadd.f32 %v1613_v29, %v1586_v59 }
 0x498   :  { %1156 = vmatprep.subr.bf16.mxu0 %v1341_v20 }
 0x49b   :  { %1157 = vmatpush3.bf16.msra.mxu0 %v1493_v25 }
 0x49c   :  { %1158 = vmatprep.subr.bf16.mxu0 %v1341_v20 }
 0x49f   :  { %1159 = vmatpush3.bf16.msra.mxu0 %v1497_v31 }
 0x4a0   :  { %1160 = vmatprep.subr.bf16.mxu0 %v1341_v20 }
 0x4a3   :  { %1161 = vmatpush3.bf16.msra.mxu0 %v1501_v35 }
 0x4a4   :  { %1162 = vmatprep.subr.bf16.mxu0 %v1341_v20 }
 0x4a7   :  { %1163 = vmatpush3.bf16.msra.mxu0 %v1508_v40 }
 0x4a8   :  { %1164 = vmatprep.subr.bf16.mxu0 %v1341_v20 }
 0x4ab   :  { %1165 = vmatpush3.bf16.msra.mxu0 %v1512_v44  ;;  %v293_v44 = vadd.f32 %v1586_v59, %v1615_v30 }
 0x4ac   :  { %1166 = vmatprep.subr.bf16.mxu0 %v1341_v20 }
 0x4af   :  { %1167 = vmatpush3.bf16.msra.mxu0 %v1516_v48 }
 0x4b0   :  { %1168 = vmatprep.subr.bf16.mxu0 %v1341_v20 }
 0x4b3   :  { %1169 = vmatpush3.bf16.msra.mxu0 %v1520_v50 }
 0x569   :  { %v614_v25 = vpop.f32.mrb[16].mxu0 }
 0x56a   :  { %v620_v31 = vadd.f32 %v614_v25, %v288_v21  ;;  %v1132_v35 = vpop.f32.mrb[17].mxu0 }
 0x56b   :  { %v617_v24 = vpop.f32.mrb[18].mxu0 }
 0x56c   :  { %v621_v40 = vmax.f32 %v620_v31, 0.0  ;;  %v1133_v26 = vpop.f32.mrb[19].mxu0 }
 0x56e   :  { %v622_v28 = vpack.c.bf16 %v621_v40, %v621_v40 }
 0x570   :  { %1151 = vmatmul.mubr.bf16.vlgmr.msra.gmra.mrb[12].mxu1 %v622_v28 }
 0x643   :  { %v657_v32 = vpop.f32.mrb[12].mxu1 }
 0x644   :  { %v663_v48 = vadd.f32 %v657_v32, %v293_v44  ;;  %v1152_v33 = vpop.f32.mrb[13].mxu1 }
 0x645   :  { %v660_v34 = vpop.f32.mrb[14].mxu1 }
 0x646   :  { %v664_v36 = vmax.f32 %v663_v48, 0.0  ;;  %v1153_v50 = vpop.f32.mrb[15].mxu1 }
 0x648   :  { %v665_v37 = vpack.c.bf16 %v664_v36, %v664_v36 }
 0x64a   :  { %1171 = vmatmul.mubr.bf16.vlgmr.msra.gmra.mrb[20].mxu0 %v665_v37 }
 0x71d   :  { %v700_v38 = vpop.f32.mrb[20].mxu0 }
 0x71e   :  { %v706_v39 = vadd.f32 %v700_v38, %v298_v27  ;;  %v1172_v41 = vpop.f32.mrb[21].mxu0 }
 0x71f   :  { %v703_v42 = vpop.f32.mrb[22].mxu0 }
 0x720   :  { %v707_v43 = vmax.f32 %v706_v39, 0.0  ;;  %v1173_v45 = vpop.f32.mrb[23].mxu0 }
 0x721   :  { %1331 = dma.done.wait [#allocation4], 2048 }
 0x722   :  { %1332 = vsyncadd [#allocation4], 4294965248  ;;  %v1242_v30 = vpack.c.bf16 %v1412_v1, %v1407_v0  ;;  %1206 = vmatprep.mubr.msk.f32.mxu1 %vm1342_vm0, %v1341_v20 }
 0x723   :  { %1333 = dma.done.wait [#allocation4 + $0x1], 16 }
 0x724   :  { %1334 = vsyncadd [#allocation4 + $0x1], 4294967280  ;;  %v1344_v46 = vmov 0.0|0.0   ;;  %v1245_v59 = vpack.c.bf16 %v1422_v3, %v1417_v2  ;;  %v1248_v29 = vpack.c.bf16 %v1432_v5, %v1427_v4  ;;  %v1251_v0 = vpack.c.bf16 %v1442_v7, %v1437_v6  ;;  %v854_v5 = vld [vmem:[#allocation3] ss:$0 sm:$0xff] }
 0x725   :  { %1241 = vmatprep.subr.bf16.mxu1 %v1344_v46  ;;  %v1254_v1 = vpack.c.bf16 %v1452_v9, %v1447_v8  ;;  %v1257_v2 = vpack.c.bf16 %v1462_v11, %v1457_v10  ;;  %v1260_v3 = vpack.c.bf16 %v1472_v13, %v1467_v12  ;;  %v1263_v4 = vpack.c.bf16 %v1482_v15, %v1477_v14 }
 0x726   :  { %1243 = vmatpush3.bf16.msra.mxu1 %v1242_v30 }
 0x727   :  { %1244 = vmatprep.subr.bf16.mxu1 %v1344_v46 }
 0x72a   :  { %1246 = vmatpush3.bf16.msra.mxu1 %v1245_v59 }
 0x72b   :  { %1247 = vmatprep.subr.bf16.mxu1 %v1344_v46 }
 0x72e   :  { %1249 = vmatpush3.bf16.msra.mxu1 %v1248_v29 }
 0x72f   :  { %1250 = vmatprep.subr.bf16.mxu1 %v1344_v46 }
 0x732   :  { %1252 = vmatpush3.bf16.msra.mxu1 %v1251_v0 }
 0x733   :  { %1253 = vmatprep.subr.bf16.mxu1 %v1344_v46 }
 0x736   :  { %1255 = vmatpush3.bf16.msra.mxu1 %v1254_v1 }
 0x737   :  { %1256 = vmatprep.subr.bf16.mxu1 %v1344_v46 }
 0x73a   :  { %1258 = vmatpush3.bf16.msra.mxu1 %v1257_v2 }
 0x73b   :  { %1259 = vmatprep.subr.bf16.mxu1 %v1344_v46 }
 0x73e   :  { %1261 = vmatpush3.bf16.msra.mxu1 %v1260_v3 }
 0x73f   :  { %1262 = vmatprep.subr.bf16.mxu1 %v1344_v46 }
 0x742   :  { %1264 = vmatpush3.bf16.msra.mxu1 %v1263_v4 }
 0x745   :  { %1207 = vmatmul.mubr.f32.vlgmr.msra.gmra.mrb[16].mxu1 %v707_v43 }
 0x818   :  { %v803_v6 = vpop.f32.mrb[16].mxu1 }
 0x819   :  { %v804_v7 = vadd.f32 %v854_v5, %v803_v6  ;;  %v1208_v8 = vpop.f32.mrb[17].mxu1 }
 0x81b   :  { %807 = vst [vmem:[%s1726_s6] sm:$0xff] %v804_v7 }
 0x81c   :  { %812 = vsyncpa [#allocation6], 1 }
 0x81d   :  { %813 = vsyncpa [#allocation8], 1 }
 0x81e   :  { %814 = vsyncmov [#allocation4] }
 0x821   :  { %s815_s22 = vpop.sfrf %814 }
 0x822   :  { %p855_p2 = scmp.ne.s32.totalorder %s815_s22, 0 }
 0x824   :  { %819 = shalt.err (%p855_p2)  }
 0x825   :  { %821 = vsyncmov [#allocation4 + $0x1] }
 0x828   :  { %s822_s23 = vpop.sfrf %821 }
 0x829   :  { %p856_p3 = scmp.ne.s32.totalorder %s822_s23, 0 }
 0x82b   :  { %826 = shalt.err (%p856_p3)  }

</bundles_post_ra>
